<compile_context>
chip_gen: v6e
topology: v6e:2x2x1
jax: 0.10.0
libtpu: 0.0.40
codegen_flags: <defaults>
</compile_context>

<pallas_src>
import math
import functools

import jax
import jax.numpy as jnp
from jax.experimental import pallas as pl
from jax.experimental.pallas import tpu as pltpu

EPS = 1e-5  # torch.nn.LayerNorm default eps


# ---------------------------- small shared math ----------------------------

def _layernorm(x, gamma, beta):
    mu = jnp.mean(x, axis=-1, keepdims=True)
    var = jnp.mean((x - mu) ** 2, axis=-1, keepdims=True)
    return (x - mu) * jax.lax.rsqrt(var + EPS) * gamma + beta


def _softmax_last(x):
    m = jnp.max(x, axis=-1, keepdims=True)
    e = jnp.exp(x - m)
    # exact division (not pl.reciprocal approx) to stay tight with the reference.
    return e / jnp.sum(e, axis=-1, keepdims=True)


def _erf(x):
    # Abramowitz & Stegun 7.1.26 polynomial (max abs err 1.5e-7); only uses
    # exp / mul / add / where, so it lowers on every TPU generation.
    a1, a2, a3, a4, a5 = 0.254829592, -0.284496736, 1.421413741, -1.453152027, 1.061405429
    p = 0.3275911
    z = jnp.abs(x)
    t = 1.0 / (1.0 + p * z)
    poly = ((((a5 * t + a4) * t + a3) * t + a2) * t + a1) * t
    y = 1.0 - poly * jnp.exp(-z * z)
    return jnp.where(x >= 0, y, -y)


def _gelu_exact(x):
    # matches torch.nn.GELU() (erf form) to ~1e-7
    return 0.5 * x * (1.0 + _erf(x * (1.0 / math.sqrt(2.0))))


# ---------------------------- fused Pallas kernel ----------------------------

def encoder_kernel(x_ref, pos_ref, aslab_ref, fslab_ref, pslab_ref, o_ref,
                   *, n_head, d_head, ff_dim):
    H, hd, FF = n_head, d_head, ff_dim
    D = H * hd
    G = 3 * H                      # q|k|v groups (one per head)
    layer = pl.program_id(1)
    M = o_ref.shape[0]             # rows of this batch tile (= seq len, one sequence)
    cdt = aslab_ref.dtype          # MXU operand dtype (bfloat16)
    scale = 1.0 / math.sqrt(hd)

    # layer 0: fuse the learned positional add (dropout = identity in eval mode)
    @pl.when(layer == 0)
    def _init():
        o_ref[...] = x_ref[...] + pos_ref[...]

    # ---- unpack the per-layer packed slabs (static prefix slices only) ----
    aslab = aslab_ref[0]                            # (4H, hd+1, D) bf16
    wqkv = aslab[0:G, 0:hd, :]                      # (3H, hd, D)  W^T per (q|k|v, head)
    bqkv = aslab[0:G, hd:hd + 1, 0:hd]              # (3H, 1, hd)  bias row per group
    wo = aslab[G:G + H, 0:hd, :]                    # (H, hd, D)   output proj per head
    fslab = fslab_ref[0]                            # (D+FF, Wf) bf16
    w1 = fslab[0:D, 0:FF]                           # (D, FF)
    w2 = fslab[D:D + FF, 0:D]                       # (FF, D)
    pp = pslab_ref[0]                               # (8, Wf) f32 LN params / biases
    g1, b1 = pp[0:1, 0:D], pp[1:2, 0:D]
    g2, b2 = pp[2:3, 0:D], pp[3:4, 0:D]
    bo, bf2 = pp[4:5, 0:D], pp[6:7, 0:D]
    bf1 = pp[5:6, 0:FF]

    a = o_ref[...]                                  # (M, D) f32 residual stream (VMEM-resident)

    # ---- pre-LN multi-head self-attention ----
    ln1 = _layernorm(a, g1, b1)                                         # f32
    lhs = jnp.broadcast_to(ln1.astype(cdt)[None], (G, M, D))            # (3H, M, D) bf16
    qkv = jnp.einsum("gmd,gkd->gmk", lhs, wqkv,
                     preferred_element_type=jnp.float32) + bqkv         # (3H, M, hd) f32
    q = (qkv[0:H] * scale).astype(cdt)              # fold 1/sqrt(hd) into q
    k = qkv[H:2 * H].astype(cdt)
    v = qkv[2 * H:G].astype(cdt)
    s = jnp.einsum("hqd,hkd->hqk", q, k, preferred_element_type=jnp.float32)   # (H, M, M)
    p = _softmax_last(s)
    ctx = jnp.einsum("hqk,hkd->hqd", p.astype(cdt), v,
                     preferred_element_type=jnp.float32)                # (H, M, hd)
    oh = jnp.einsum("hqd,hde->hqe", ctx.astype(cdt), wo,
                    preferred_element_type=jnp.float32)                 # (H, M, D)
    # head merge done as a leading-axis reduction instead of a concat/relayout:
    # sum_h ctx_h @ Wo_h == concat(ctx) @ Wo.
    a = a + oh.sum(axis=0) + bo                     # nn.Dropout(0.1) = identity (eval)

    # ---- pre-LN position-wise feed-forward ----
    ln2 = _layernorm(a, g2, b2)
    h1 = jnp.dot(ln2.astype(cdt), w1, preferred_element_type=jnp.float32) + bf1
    h1 = _gelu_exact(h1)
    ff = jnp.dot(h1.astype(cdt), w2, preferred_element_type=jnp.float32) + bf2
    o_ref[...] = a + ff


# ---------------------------- weight packing ----------------------------

def prepare_params(params, n_head, compute_dtype=jnp.bfloat16):
    """Pack per-layer weights into 3 stacked slabs.

    attn slab (L, 4H, hd+1, D) bf16: chunks 0..3H-1 are (q|k|v, head) blocks
      [rows 0:hd = W_head^T, row hd = bias_head in lanes 0:hd]; chunks
      3H..4H-1 are the per-head rows of the output projection.
    ffn slab  (L, D+FF, max(D,FF)) bf16: W1 rows then W2 rows (zero padded).
    f32 slab  (L, 8, max(D,FF)): g1, b1, g2, b2, bo, bf1, bf2, pad.
    """
    layers = params["layers"]
    D = layers[0]["wq"].shape[0]
    FF = layers[0]["w1"].shape[1]
    H = n_head
    hd = D // H
    Wf = max(D, FF)

    aslabs, fslabs, pslabs = [], [], []
    for lp in layers:
        chunks = []
        for wname, bname in (("wq", "bq"), ("wk", "bk"), ("wv", "bv")):
            wm, bm = lp[wname], lp[bname]
            for h in range(H):
                wt = wm[:, h * hd:(h + 1) * hd].T                       # (hd, D)
                brow = jnp.zeros((1, D), jnp.float32)
                brow = brow.at[0, :hd].set(bm[0, h * hd:(h + 1) * hd])
                chunks.append(jnp.concatenate([wt, brow], axis=0))      # (hd+1, D)
        for h in range(H):
            woh = lp["wo"][h * hd:(h + 1) * hd, :]                      # (hd, D)
            chunks.append(jnp.concatenate(
                [woh, jnp.zeros((1, D), jnp.float32)], axis=0))
        aslabs.append(jnp.stack(chunks, axis=0).astype(compute_dtype))  # (4H, hd+1, D)

        def pad_w(m):
            return jnp.pad(m, ((0, 0), (0, Wf - m.shape[1])))
        fslabs.append(jnp.concatenate([pad_w(lp["w1"]), pad_w(lp["w2"])],
                                      axis=0).astype(compute_dtype))    # (D+FF, Wf)

        def row(v):
            v = v.reshape(1, -1)
            return jnp.pad(v, ((0, 0), (0, Wf - v.shape[1])))
        pslabs.append(jnp.concatenate(
            [row(lp["g1"]), row(lp["b1"]), row(lp["g2"]), row(lp["b2"]),
             row(lp["bo"]), row(lp["bf1"]), row(lp["bf2"]),
             jnp.zeros((1, Wf), jnp.float32)], axis=0))                 # (8, Wf)

    return jnp.stack(aslabs), jnp.stack(fslabs), jnp.stack(pslabs)


# ---------------------------- wrapper ----------------------------

def encoder_forward(x, params, n_head):
    B, T, D = x.shape
    H = n_head
    hd = D // H
    FF = params["layers"][0]["w1"].shape[1]
    Wf = max(D, FF)
    assert T % 8 == 0, "seq len per batch tile must be a multiple of 8 (sublane)"

    aslab, fslab, pslab = prepare_params(params, H)
    L = aslab.shape[0]
    pos = params["pos"][:T]                  # glue: slice learned table to seq len
    xf = x.reshape(B * T, D)                 # lane-dense (rows, D) activation layout

    kernel = functools.partial(encoder_kernel, n_head=H, d_head=hd, ff_dim=FF)
    out = pl.pallas_call(
        kernel,
        out_shape=jax.ShapeDtypeStruct((B * T, D), jnp.float32),
        grid_spec=pltpu.PrefetchScalarGridSpec(
            num_scalar_prefetch=0,
            grid=(B, L),                     # (parallel batch tiles, layer sweep)
            in_specs=[
                pl.BlockSpec((T, D), lambda b, l: (b, 0)),              # x rows of this tile
                pl.BlockSpec((T, D), lambda b, l: (0, 0)),              # pos (resident)
                pl.BlockSpec((1, 4 * H, hd + 1, D), lambda b, l: (l, 0, 0, 0)),
                pl.BlockSpec((1, D + FF, Wf), lambda b, l: (l, 0, 0)),
                pl.BlockSpec((1, 8, Wf), lambda b, l: (l, 0, 0)),
            ],
            # residual stream carried in the resident output block (no scratch,
            # no HBM round trip between layers).
            out_specs=pl.BlockSpec((T, D), lambda b, l: (b, 0)),
        ),
        compiler_params=pltpu.CompilerParams(
            # batch axis parallel (v7x megacore), layer axis carries state.
            dimension_semantics=("parallel", "arbitrary")),
    )(xf, pos, aslab, fslab, pslab)
    return out.reshape(B, T, D)


# ---------------------------- params & reference ----------------------------

def init_params(key, n_embd, n_head, ff_dim, n_layer, max_seq_len=100):
    keys = jax.random.split(key, 1 + n_layer)
    params = {"pos": 0.02 * jax.random.normal(keys[0], (max_seq_len, n_embd), jnp.float32),
              "layers": []}
    for li in range(n_layer):
        ks = jax.random.split(keys[1 + li], 12)

        def w(k, shape):
            return 0.02 * jax.random.normal(k, shape, jnp.float32)

        lp = {
            "g1": jnp.ones((1, n_embd), jnp.float32),
            "b1": jnp.zeros((1, n_embd), jnp.float32),
            # per-head qkv Linear weights, concatenated over heads along columns
            "wq": w(ks[0], (n_embd, n_embd)), "bq": w(ks[1], (1, n_embd)),
            "wk": w(ks[2], (n_embd, n_embd)), "bk": w(ks[3], (1, n_embd)),
            "wv": w(ks[4], (n_embd, n_embd)), "bv": w(ks[5], (1, n_embd)),
            "wo": w(ks[6], (n_embd, n_embd)), "bo": w(ks[7], (1, n_embd)),
            "g2": jnp.ones((1, n_embd), jnp.float32),
            "b2": jnp.zeros((1, n_embd), jnp.float32),
            "w1": w(ks[8], (n_embd, ff_dim)), "bf1": w(ks[9], (1, ff_dim)),
            "w2": w(ks[10], (ff_dim, n_embd)), "bf2": w(ks[11], (1, n_embd)),
        }
        params["layers"].append(lp)
    return params


def encoder_reference(x, params, n_head):
    """Independent straightforward-JAX reference (per-head loops, concat, exact
    erf GELU).  Matmul operands are cast to bf16 / accumulated in f32 to mirror
    the kernel's MXU policy; everything else is f32."""
    B, T, D = x.shape
    hd = D // n_head

    def mm(a, w):
        return jnp.dot(a.astype(jnp.bfloat16), w.astype(jnp.bfloat16),
                       preferred_element_type=jnp.float32)

    h = x + params["pos"][:T][None]                    # dropout = identity (eval)
    for lp in params["layers"]:
        ln1 = _layernorm(h, lp["g1"], lp["b1"])
        q = mm(ln1, lp["wq"]) + lp["bq"]
        k = mm(ln1, lp["wk"]) + lp["bk"]
        v = mm(ln1, lp["wv"]) + lp["bv"]
        heads = []
        for i in range(n_head):
            sl = slice(i * hd, (i + 1) * hd)
            s = jnp.einsum("btd,bsd->bts",
                           q[..., sl].astype(jnp.bfloat16),
                           k[..., sl].astype(jnp.bfloat16),
                           preferred_element_type=jnp.float32) / math.sqrt(hd)
            p = jax.nn.softmax(s, axis=-1)
            heads.append(jnp.einsum("bts,bsd->btd",
                                    p.astype(jnp.bfloat16),
                                    v[..., sl].astype(jnp.bfloat16),
                                    preferred_element_type=jnp.float32))
        attn = mm(jnp.concatenate(heads, axis=-1), lp["wo"]) + lp["bo"]
        h = h + attn
        ln2 = _layernorm(h, lp["g2"], lp["b2"])
        ff = mm(jax.nn.gelu(mm(ln2, lp["w1"]) + lp["bf1"], approximate=False),
                lp["w2"]) + lp["bf2"]
        h = h + ff
    return h


if __name__ == "__main__":
    B, T, D, H, FF, L = 2, 8, 32, 4, 64, 2   # batch, seq, n_embd, n_head, ff_dim, n_layer
    key = jax.random.PRNGKey(0)
    kx, kp = jax.random.split(key)
    x = jax.random.normal(kx, (B, T, D), jnp.float32)
    params = init_params(kp, D, H, FF, L)

    out = jax.block_until_ready(encoder_forward(x, params, H))

    ref = encoder_reference(x, params, H)
    assert out.shape == (B, T, D) and out.dtype == jnp.float32
    err = float(jnp.max(jnp.abs(out - ref)))
    assert jnp.allclose(out, ref, atol=2e-3, rtol=2e-3), f"max abs err = {err}"
    print("KERNEL_OK")
</pallas_src>

<mosaic_0001>
module attributes {stable_mosaic.version = 11 : i64} {
  func.func @encoder_kernel(%arg0: i32, %arg1: i32, %arg2: memref<8x32xf32, #tpu.memory_space<vmem>>, %arg3: memref<8x32xf32, #tpu.memory_space<vmem>>, %arg4: memref<1x16x9x32xbf16, #tpu.memory_space<vmem>>, %arg5: memref<1x96x64xbf16, #tpu.memory_space<vmem>>, %arg6: memref<1x8x64xf32, #tpu.memory_space<vmem>>, %arg7: memref<8x32xf32, #tpu.memory_space<vmem>>) attributes {dimension_semantics = [#tpu.dimension_semantics<parallel>, #tpu.dimension_semantics<arbitrary>], iteration_bounds = array<i64: 2, 2>, scalar_prefetch = 0 : i64, scratch_operands = 0 : i64, tpu.core_type = #tpu.core_type<tc>, window_params = [{transform_indices = @transform_0, window_bounds = array<i64: 8, 32>}, {pipeline_mode = #tpu.pipeline_mode<synchronous>, transform_indices = @transform_1, window_bounds = array<i64: 8, 32>}, {transform_indices = @transform_2, window_bounds = array<i64: 1, 16, 9, 32>}, {transform_indices = @transform_3, window_bounds = array<i64: 1, 96, 64>}, {transform_indices = @transform_4, window_bounds = array<i64: 1, 8, 64>}, {transform_indices = @transform_5, window_bounds = array<i64: 8, 32>}]} {
    %c0_i32 = arith.constant 0 : i32
    %0 = arith.cmpi eq, %arg1, %c0_i32 : i32
    %1 = arith.extui %0 : i1 to i32
    %c0_i32_0 = arith.constant 0 : i32
    %2 = arith.cmpi ne, %1, %c0_i32_0 : i32
    scf.if %2 {
      %c0_48 = arith.constant 0 : index
      %c0_49 = arith.constant 0 : index
      %150 = vector.load %arg2[%c0_48, %c0_49] : memref<8x32xf32, #tpu.memory_space<vmem>>, vector<8x32xf32>
      %c0_50 = arith.constant 0 : index
      %c0_51 = arith.constant 0 : index
      %151 = vector.load %arg3[%c0_50, %c0_51] : memref<8x32xf32, #tpu.memory_space<vmem>>, vector<8x32xf32>
      %152 = arith.addf %150, %151 : vector<8x32xf32>
      %c0_52 = arith.constant 0 : index
      %c0_53 = arith.constant 0 : index
      %153 = vector.load %arg7[%c0_52, %c0_53] : memref<8x32xf32, #tpu.memory_space<vmem>>, vector<8x32xf32>
      tpu.vector_store %arg7[%c0_52, %c0_53], %152 {strides = array<i32>} : memref<8x32xf32, #tpu.memory_space<vmem>>, vector<8x32xf32>,
    } else {
    }
    %c0 = arith.constant 0 : index
    %c0_1 = arith.constant 0 : index
    %c0_2 = arith.constant 0 : index
    %c0_3 = arith.constant 0 : index
    %3 = vector.load %arg4[%c0, %c0_1, %c0_2, %c0_3] : memref<1x16x9x32xbf16, #tpu.memory_space<vmem>>, vector<1x16x9x32xbf16>
    %4 = vector.shape_cast %3 : vector<1x16x9x32xbf16> to vector<16x9x32xbf16>
    %5 = vector.extract_strided_slice %4 {offsets = [0, 0, 0], sizes = [12, 8, 32], strides = [1, 1, 1]} : vector<16x9x32xbf16> to vector<12x8x32xbf16>
    %6 = vector.extract_strided_slice %4 {offsets = [0, 8, 0], sizes = [12, 1, 8], strides = [1, 1, 1]} : vector<16x9x32xbf16> to vector<12x1x8xbf16>
    %7 = vector.extract_strided_slice %4 {offsets = [12, 0, 0], sizes = [4, 8, 32], strides = [1, 1, 1]} : vector<16x9x32xbf16> to vector<4x8x32xbf16>
    %c0_4 = arith.constant 0 : index
    %c0_5 = arith.constant 0 : index
    %c0_6 = arith.constant 0 : index
    %8 = vector.load %arg5[%c0_4, %c0_5, %c0_6] : memref<1x96x64xbf16, #tpu.memory_space<vmem>>, vector<1x96x64xbf16>
    %9 = vector.shape_cast %8 : vector<1x96x64xbf16> to vector<96x64xbf16>
    %10 = vector.extract_strided_slice %9 {offsets = [0, 0], sizes = [32, 64], strides = [1, 1]} : vector<96x64xbf16> to vector<32x64xbf16>
    %11 = vector.extract_strided_slice %9 {offsets = [32, 0], sizes = [64, 32], strides = [1, 1]} : vector<96x64xbf16> to vector<64x32xbf16>
    %c0_7 = arith.constant 0 : index
    %c0_8 = arith.constant 0 : index
    %c0_9 = arith.constant 0 : index
    %12 = vector.load %arg6[%c0_7, %c0_8, %c0_9] : memref<1x8x64xf32, #tpu.memory_space<vmem>>, vector<1x8x64xf32>
    %13 = vector.shape_cast %12 : vector<1x8x64xf32> to vector<8x64xf32>
    %14 = vector.extract_strided_slice %13 {offsets = [0, 0], sizes = [1, 32], strides = [1, 1]} : vector<8x64xf32> to vector<1x32xf32>
    %15 = vector.extract_strided_slice %13 {offsets = [1, 0], sizes = [1, 32], strides = [1, 1]} : vector<8x64xf32> to vector<1x32xf32>
    %16 = vector.extract_strided_slice %13 {offsets = [2, 0], sizes = [1, 32], strides = [1, 1]} : vector<8x64xf32> to vector<1x32xf32>
    %17 = vector.extract_strided_slice %13 {offsets = [3, 0], sizes = [1, 32], strides = [1, 1]} : vector<8x64xf32> to vector<1x32xf32>
    %18 = vector.extract_strided_slice %13 {offsets = [4, 0], sizes = [1, 32], strides = [1, 1]} : vector<8x64xf32> to vector<1x32xf32>
    %19 = vector.extract_strided_slice %13 {offsets = [6, 0], sizes = [1, 32], strides = [1, 1]} : vector<8x64xf32> to vector<1x32xf32>
    %20 = vector.extract_strided_slice %13 {offsets = [5, 0], sizes = [1, 64], strides = [1, 1]} : vector<8x64xf32> to vector<1x64xf32>
    %c0_10 = arith.constant 0 : index
    %c0_11 = arith.constant 0 : index
    %21 = vector.load %arg7[%c0_10, %c0_11] : memref<8x32xf32, #tpu.memory_space<vmem>>, vector<8x32xf32>
    %cst = arith.constant dense<0.000000e+00> : vector<8xf32>
    %22 = vector.multi_reduction <add>, %21, %cst [1] : vector<8x32xf32> to vector<8xf32>
    %23 = vector.shape_cast %22 : vector<8xf32> to vector<8x1xf32>
    %cst_12 = arith.constant 3.200000e+01 : f32
    %24 = vector.broadcast %cst_12 : f32 to vector<8x1xf32>
    %25 = arith.divf %23, %24 : vector<8x1xf32>
    %26 = vector.broadcast %25 : vector<8x1xf32> to vector<8x32xf32>
    %27 = arith.subf %21, %26 : vector<8x32xf32>
    %28 = arith.mulf %27, %27 : vector<8x32xf32>
    %cst_13 = arith.constant dense<0.000000e+00> : vector<8xf32>
    %29 = vector.multi_reduction <add>, %28, %cst_13 [1] : vector<8x32xf32> to vector<8xf32>
    %30 = vector.shape_cast %29 : vector<8xf32> to vector<8x1xf32>
    %cst_14 = arith.constant 3.200000e+01 : f32
    %31 = vector.broadcast %cst_14 : f32 to vector<8x1xf32>
    %32 = arith.divf %30, %31 : vector<8x1xf32>
    %33 = vector.broadcast %25 : vector<8x1xf32> to vector<8x32xf32>
    %34 = arith.subf %21, %33 : vector<8x32xf32>
    %cst_15 = arith.constant 9.99999974E-6 : f32
    %35 = vector.broadcast %cst_15 : f32 to vector<8x1xf32>
    %36 = arith.addf %32, %35 : vector<8x1xf32>
    %37 = math.rsqrt %36 : vector<8x1xf32>
    %38 = vector.broadcast %37 : vector<8x1xf32> to vector<8x32xf32>
    %39 = arith.mulf %34, %38 : vector<8x32xf32>
    %40 = vector.broadcast %14 : vector<1x32xf32> to vector<8x32xf32>
    %41 = arith.mulf %39, %40 : vector<8x32xf32>
    %42 = vector.broadcast %15 : vector<1x32xf32> to vector<8x32xf32>
    %43 = arith.addf %41, %42 : vector<8x32xf32>
    %44 = arith.truncf %43 : vector<8x32xf32> to vector<8x32xbf16>
    %45 = vector.shape_cast %44 : vector<8x32xbf16> to vector<1x8x32xbf16>
    %46 = vector.shape_cast %45 : vector<1x8x32xbf16> to vector<1x8x32xbf16>
    %47 = vector.broadcast %46 : vector<1x8x32xbf16> to vector<12x8x32xbf16>
    "tpu.trace_start"() <{level = 10 : i32, message = "gmd,gkd->gmk"}> : () -> ()
    %cst_16 = arith.constant dense<0.000000e+00> : vector<12x8x8xf32>
    %48 = tpu.matmul %47, %5, %cst_16 {dimension_numbers = #tpu.dot_dimension_numbers<[2], [2], [1], [1], [0, 0, 0, 1, 1, 1], [0], [0]>} : vector<12x8x32xbf16>, vector<12x8x32xbf16>, vector<12x8x8xf32> -> vector<12x8x8xf32>
    "tpu.trace_stop"() : () -> ()
    %49 = arith.extf %6 : vector<12x1x8xbf16> to vector<12x1x8xf32>
    %50 = vector.broadcast %49 : vector<12x1x8xf32> to vector<12x8x8xf32>
    %51 = arith.addf %48, %50 : vector<12x8x8xf32>
    %52 = vector.extract_strided_slice %51 {offsets = [0, 0, 0], sizes = [4, 8, 8], strides = [1, 1, 1]} : vector<12x8x8xf32> to vector<4x8x8xf32>
    %cst_17 = arith.constant 0.353553385 : f32
    %53 = vector.broadcast %cst_17 : f32 to vector<4x8x8xf32>
    %54 = arith.mulf %52, %53 : vector<4x8x8xf32>
    %55 = arith.truncf %54 : vector<4x8x8xf32> to vector<4x8x8xbf16>
    %56 = vector.extract_strided_slice %51 {offsets = [4, 0, 0], sizes = [4, 8, 8], strides = [1, 1, 1]} : vector<12x8x8xf32> to vector<4x8x8xf32>
    %57 = arith.truncf %56 : vector<4x8x8xf32> to vector<4x8x8xbf16>
    %58 = vector.extract_strided_slice %51 {offsets = [8, 0, 0], sizes = [4, 8, 8], strides = [1, 1, 1]} : vector<12x8x8xf32> to vector<4x8x8xf32>
    %59 = arith.truncf %58 : vector<4x8x8xf32> to vector<4x8x8xbf16>
    "tpu.trace_start"() <{level = 10 : i32, message = "hqd,hkd->hqk"}> : () -> ()
    %cst_18 = arith.constant dense<0.000000e+00> : vector<4x8x8xf32>
    %60 = tpu.matmul %55, %57, %cst_18 {dimension_numbers = #tpu.dot_dimension_numbers<[2], [2], [1], [1], [0, 0, 0, 1, 1, 1], [0], [0]>} : vector<4x8x8xbf16>, vector<4x8x8xbf16>, vector<4x8x8xf32> -> vector<4x8x8xf32>
    "tpu.trace_stop"() : () -> ()
    %cst_19 = arith.constant dense<0xFF800000> : vector<4x8xf32>
    %61 = vector.multi_reduction <maximumf>, %60, %cst_19 [2] : vector<4x8x8xf32> to vector<4x8xf32>
    %62 = vector.shape_cast %61 : vector<4x8xf32> to vector<4x8x1xf32>
    %63 = vector.broadcast %62 : vector<4x8x1xf32> to vector<4x8x8xf32>
    %64 = arith.subf %60, %63 : vector<4x8x8xf32>
    %65 = math.exp %64 : vector<4x8x8xf32>
    %cst_20 = arith.constant dense<0.000000e+00> : vector<4x8xf32>
    %66 = vector.multi_reduction <add>, %65, %cst_20 [2] : vector<4x8x8xf32> to vector<4x8xf32>
    %67 = vector.shape_cast %66 : vector<4x8xf32> to vector<4x8x1xf32>
    %68 = vector.broadcast %67 : vector<4x8x1xf32> to vector<4x8x8xf32>
    %69 = arith.divf %65, %68 : vector<4x8x8xf32>
    %70 = arith.truncf %69 : vector<4x8x8xf32> to vector<4x8x8xbf16>
    "tpu.trace_start"() <{level = 10 : i32, message = "hqk,hkd->hqd"}> : () -> ()
    %cst_21 = arith.constant dense<0.000000e+00> : vector<4x8x8xf32>
    %71 = tpu.matmul %70, %59, %cst_21 {dimension_numbers = #tpu.dot_dimension_numbers<[2], [1], [1], [2], [0, 0, 0, 1, 1, 2], [0], [0]>} : vector<4x8x8xbf16>, vector<4x8x8xbf16>, vector<4x8x8xf32> -> vector<4x8x8xf32>
    "tpu.trace_stop"() : () -> ()
    %72 = arith.truncf %71 : vector<4x8x8xf32> to vector<4x8x8xbf16>
    "tpu.trace_start"() <{level = 10 : i32, message = "hqd,hde->hqe"}> : () -> ()
    %cst_22 = arith.constant dense<0.000000e+00> : vector<4x8x32xf32>
    %73 = tpu.matmul %72, %7, %cst_22 {dimension_numbers = #tpu.dot_dimension_numbers<[2], [1], [1], [2], [0, 0, 0, 1, 1, 2], [0], [0]>} : vector<4x8x8xbf16>, vector<4x8x32xbf16>, vector<4x8x32xf32> -> vector<4x8x32xf32>
    "tpu.trace_stop"() : () -> ()
    %cst_23 = arith.constant dense<0.000000e+00> : vector<8x32xf32>
    %74 = vector.multi_reduction <add>, %73, %cst_23 [0] : vector<4x8x32xf32> to vector<8x32xf32>
    %75 = arith.addf %21, %74 : vector<8x32xf32>
    %76 = vector.broadcast %18 : vector<1x32xf32> to vector<8x32xf32>
    %77 = arith.addf %75, %76 : vector<8x32xf32>
    %cst_24 = arith.constant dense<0.000000e+00> : vector<8xf32>
    %78 = vector.multi_reduction <add>, %77, %cst_24 [1] : vector<8x32xf32> to vector<8xf32>
    %79 = vector.shape_cast %78 : vector<8xf32> to vector<8x1xf32>
    %cst_25 = arith.constant 3.200000e+01 : f32
    %80 = vector.broadcast %cst_25 : f32 to vector<8x1xf32>
    %81 = arith.divf %79, %80 : vector<8x1xf32>
    %82 = vector.broadcast %81 : vector<8x1xf32> to vector<8x32xf32>
    %83 = arith.subf %77, %82 : vector<8x32xf32>
    %84 = arith.mulf %83, %83 : vector<8x32xf32>
    %cst_26 = arith.constant dense<0.000000e+00> : vector<8xf32>
    %85 = vector.multi_reduction <add>, %84, %cst_26 [1] : vector<8x32xf32> to vector<8xf32>
    %86 = vector.shape_cast %85 : vector<8xf32> to vector<8x1xf32>
    %cst_27 = arith.constant 3.200000e+01 : f32
    %87 = vector.broadcast %cst_27 : f32 to vector<8x1xf32>
    %88 = arith.divf %86, %87 : vector<8x1xf32>
    %89 = vector.broadcast %81 : vector<8x1xf32> to vector<8x32xf32>
    %90 = arith.subf %77, %89 : vector<8x32xf32>
    %cst_28 = arith.constant 9.99999974E-6 : f32
    %91 = vector.broadcast %cst_28 : f32 to vector<8x1xf32>
    %92 = arith.addf %88, %91 : vector<8x1xf32>
    %93 = math.rsqrt %92 : vector<8x1xf32>
    %94 = vector.broadcast %93 : vector<8x1xf32> to vector<8x32xf32>
    %95 = arith.mulf %90, %94 : vector<8x32xf32>
    %96 = vector.broadcast %16 : vector<1x32xf32> to vector<8x32xf32>
    %97 = arith.mulf %95, %96 : vector<8x32xf32>
    %98 = vector.broadcast %17 : vector<1x32xf32> to vector<8x32xf32>
    %99 = arith.addf %97, %98 : vector<8x32xf32>
    %100 = arith.truncf %99 : vector<8x32xf32> to vector<8x32xbf16>
    %cst_29 = arith.constant dense<0.000000e+00> : vector<8x64xf32>
    %101 = tpu.matmul %100, %10, %cst_29 {dimension_numbers = #tpu.dot_dimension_numbers<[1], [0], [0], [1], [0, 0, 1, 1], [], []>} : vector<8x32xbf16>, vector<32x64xbf16>, vector<8x64xf32> -> vector<8x64xf32>
    %102 = vector.broadcast %20 : vector<1x64xf32> to vector<8x64xf32>
    %103 = arith.addf %101, %102 : vector<8x64xf32>
    %cst_30 = arith.constant 5.000000e-01 : f32
    %104 = vector.broadcast %cst_30 : f32 to vector<8x64xf32>
    %105 = arith.mulf %104, %103 : vector<8x64xf32>
    %cst_31 = arith.constant 0.707106769 : f32
    %106 = vector.broadcast %cst_31 : f32 to vector<8x64xf32>
    %107 = arith.mulf %103, %106 : vector<8x64xf32>
    %108 = math.absf %107 : vector<8x64xf32>
    %cst_32 = arith.constant 0.327591091 : f32
    %109 = vector.broadcast %cst_32 : f32 to vector<8x64xf32>
    %110 = arith.mulf %109, %108 : vector<8x64xf32>
    %cst_33 = arith.constant 1.000000e+00 : f32
    %111 = vector.broadcast %cst_33 : f32 to vector<8x64xf32>
    %112 = arith.addf %111, %110 : vector<8x64xf32>
    %cst_34 = arith.constant 1.000000e+00 : f32
    %113 = vector.broadcast %cst_34 : f32 to vector<8x64xf32>
    %114 = arith.divf %113, %112 : vector<8x64xf32>
    %cst_35 = arith.constant 1.06140542 : f32
    %115 = vector.broadcast %cst_35 : f32 to vector<8x64xf32>
    %116 = arith.mulf %115, %114 : vector<8x64xf32>
    %cst_36 = arith.constant -1.45315206 : f32
    %117 = vector.broadcast %cst_36 : f32 to vector<8x64xf32>
    %118 = arith.addf %116, %117 : vector<8x64xf32>
    %119 = arith.mulf %118, %114 : vector<8x64xf32>
    %cst_37 = arith.constant 1.42141378 : f32
    %120 = vector.broadcast %cst_37 : f32 to vector<8x64xf32>
    %121 = arith.addf %119, %120 : vector<8x64xf32>
    %122 = arith.mulf %121, %114 : vector<8x64xf32>
    %cst_38 = arith.constant -0.284496725 : f32
    %123 = vector.broadcast %cst_38 : f32 to vector<8x64xf32>
    %124 = arith.addf %122, %123 : vector<8x64xf32>
    %125 = arith.mulf %124, %114 : vector<8x64xf32>
    %cst_39 = arith.constant 0.254829586 : f32
    %126 = vector.broadcast %cst_39 : f32 to vector<8x64xf32>
    %127 = arith.addf %125, %126 : vector<8x64xf32>
    %128 = arith.mulf %127, %114 : vector<8x64xf32>
    %cst_40 = arith.constant 0.000000e+00 : f32
    %129 = vector.broadcast %cst_40 : f32 to vector<8x64xf32>
    %130 = arith.subf %129, %108 : vector<8x64xf32>
    %131 = arith.mulf %130, %108 : vector<8x64xf32>
    %132 = math.exp %131 : vector<8x64xf32>
    %133 = arith.mulf %128, %132 : vector<8x64xf32>
    %cst_41 = arith.constant 1.000000e+00 : f32
    %134 = vector.broadcast %cst_41 : f32 to vector<8x64xf32>
    %135 = arith.subf %134, %133 : vector<8x64xf32>
    %cst_42 = arith.constant 0.000000e+00 : f32
    %136 = vector.broadcast %cst_42 : f32 to vector<8x64xf32>
    %137 = arith.cmpf oge, %107, %136 : vector<8x64xf32>
    %cst_43 = arith.constant 0.000000e+00 : f32
    %138 = vector.broadcast %cst_43 : f32 to vector<8x64xf32>
    %139 = arith.subf %138, %135 : vector<8x64xf32>
    %140 = arith.select %137, %135, %139 : vector<8x64xi1>, vector<8x64xf32>
    %cst_44 = arith.constant 1.000000e+00 : f32
    %141 = vector.broadcast %cst_44 : f32 to vector<8x64xf32>
    %142 = arith.addf %141, %140 : vector<8x64xf32>
    %143 = arith.mulf %105, %142 : vector<8x64xf32>
    %144 = arith.truncf %143 : vector<8x64xf32> to vector<8x64xbf16>
    %cst_45 = arith.constant dense<0.000000e+00> : vector<8x32xf32>
    %145 = tpu.matmul %144, %11, %cst_45 {dimension_numbers = #tpu.dot_dimension_numbers<[1], [0], [0], [1], [0, 0, 1, 1], [], []>} : vector<8x64xbf16>, vector<64x32xbf16>, vector<8x32xf32> -> vector<8x32xf32>
    %146 = vector.broadcast %19 : vector<1x32xf32> to vector<8x32xf32>
    %147 = arith.addf %145, %146 : vector<8x32xf32>
    %148 = arith.addf %77, %147 : vector<8x32xf32>
    %c0_46 = arith.constant 0 : index
    %c0_47 = arith.constant 0 : index
    %149 = vector.load %arg7[%c0_46, %c0_47] : memref<8x32xf32, #tpu.memory_space<vmem>>, vector<8x32xf32>
    tpu.vector_store %arg7[%c0_46, %c0_47], %148 {strides = array<i32>} : memref<8x32xf32, #tpu.memory_space<vmem>>, vector<8x32xf32>,
    return
  }
  func.func @transform_0(%arg0: i32, %arg1: i32) -> (i32, i32) {
    %c0_i32 = arith.constant 0 : i32
    %c0_i32_0 = arith.constant 0 : i32
    return %arg0, %c0_i32 : i32, i32
  }
  func.func @transform_1(%arg0: i32, %arg1: i32) -> (i32, i32) {
    %c0_i32 = arith.constant 0 : i32
    %c0_i32_0 = arith.constant 0 : i32
    %c0_i32_1 = arith.constant 0 : i32
    return %c0_i32, %c0_i32_0 : i32, i32
  }
  func.func @transform_2(%arg0: i32, %arg1: i32) -> (i32, i32, i32, i32) {
    %c0_i32 = arith.constant 0 : i32
    %c0_i32_0 = arith.constant 0 : i32
    %c0_i32_1 = arith.constant 0 : i32
    %c0_i32_2 = arith.constant 0 : i32
    return %arg1, %c0_i32, %c0_i32_0, %c0_i32_1 : i32, i32, i32, i32
  }
  func.func @transform_3(%arg0: i32, %arg1: i32) -> (i32, i32, i32) {
    %c0_i32 = arith.constant 0 : i32
    %c0_i32_0 = arith.constant 0 : i32
    %c0_i32_1 = arith.constant 0 : i32
    return %arg1, %c0_i32, %c0_i32_0 : i32, i32, i32
  }
  func.func @transform_4(%arg0: i32, %arg1: i32) -> (i32, i32, i32) {
    %c0_i32 = arith.constant 0 : i32
    %c0_i32_0 = arith.constant 0 : i32
    %c0_i32_1 = arith.constant 0 : i32
    return %arg1, %c0_i32, %c0_i32_0 : i32, i32, i32
  }
  func.func @transform_5(%arg0: i32, %arg1: i32) -> (i32, i32) {
    %c0_i32 = arith.constant 0 : i32
    %c0_i32_0 = arith.constant 0 : i32
    return %arg0, %c0_i32 : i32, i32
  }
}

</mosaic_0001>

<bundles_post_ra>
// kernel: tpu_custom_call.1
= control target key start
LH: loop header
LB: loop body
LE: loop exit
PB: predicated region body
PF: predicated region fallthrough
CT: control target
= control target key end

     0   :  { %10 = vsyncpa [#allocation3], 0  ;;  %s2786_s0 = inlined_call_operand.vmem [shape: f32[16,32], index: 0, kind: input, shape index: {}]   ;;  %s2787_s1 = inlined_call_operand.vmem [shape: f32[8,32], index: 1, kind: input, shape index: {}]   ;;  %s2788_s2 = inlined_call_operand.vmem [shape: bf16[2,16,9,32], index: 2, kind: input, shape index: {}]   ;;  %s2789_s3 = inlined_call_operand.vmem [shape: bf16[2,96,64], index: 3, kind: input, shape index: {}]   ;;  %s2790_s4 = inlined_call_operand.vmem [shape: f32[2,8,64], index: 4, kind: input, shape index: {}]   ;;  %s2791_s5 = inlined_call_operand.hbm [shape: f32[16,32], index: 5, kind: output, shape index: {}]  }
   0x1   :  { %12 = vsyncpa [#allocation3 + $0x1], 0  ;;  %s2386_s18 = smov 0   ;;  %s2388_s19 = smov 0  }
   0x2   :  { %s2390_s20 = smov 0   ;;  %s2392_s21 = smov 0  }
   0x3   :  { %s2394_s22 = smov 0   ;;  %s2396_s23 = smov 0  }
   0x4   :  { %s2398_s24 = smov 0   ;;  %s2400_s25 = smov 0  }
   0x5 LB: > { %2797 = sst [smem:[#allocation5_spill]] %s2331_s20  ;;  %s1886_s26 = sadd.s32 4294967295, %s2351_s25   ;;  %s2351_s25 = sphi %s2400_s25, %s18_s25   ;;  %s2347_s24 = sphi %s2398_s24, %s2811_s24   ;;  %s2343_s23 = sphi %s2396_s23, %s2810_s23   ;;  %s2339_s22 = sphi %s2394_s22, %s2809_s22   ;;  %s2335_s21 = sphi %s2392_s21, %s2808_s21   ;;  %s2331_s20 = sphi %s2390_s20, %s2807_s20   ;;  %s2327_s19 = sphi %s2388_s19, %s2813_s19   ;;  %s2323_s18 = sphi %s2386_s18, %s2812_s18  }
   0x6   : > { %2798 = sst [smem:[#allocation6_spill]] %s2343_s23  ;;  %s1887_s27 = sadd.s32 4294967294, %s2351_s25  }
   0x7   : > { %2799 = sst [smem:[#allocation7_spill]] %s2347_s24  ;;  %s27_s28 = sadd.s32 1, %s2343_s23 }
   0x8   : > { %p28_p0 = scmp.ge.s32.totalorder %s27_s28, 2  ;;  %s30_s29 = sadd.s32 1, %s2347_s24 }
   0x9   : > { %p172_p1 = scmp.ne.s32.totalorder %s2331_s20, %s2327_s19  ;;  %p173_p2 = scmp.eq.s32.totalorder %s1886_s26, 3 }
   0xa   : > { %s2815_s28 = smov (%p28_p0, %s27_s28), 0  ;;  %s2817_s29 = smov (!%p28_p0, %s30_s29), %s2347_s24 }
   0xb   : > { %2800 = sst [smem:[#allocation8_spill]] %s2815_s28  ;;  %p2435_p3 = por %p173_p2, %p172_p1 }
   0xc   : > { %p178_p4 = scmp.ne.s32.totalorder %s2327_s19, %s2323_s18  ;;  %p32_p5 = scmp.ge.s32.totalorder %s2817_s29, 2 }
   0xd   : > { %p179_p6 = scmp.eq.s32.totalorder %s1887_s27, 3  ;;  %p1890_p7 = scmp.ge.s32.totalorder %s2351_s25, 1 }
   0xe   : > { %p230_p8 = scmp.lt.s32.totalorder %s2351_s25, 5  ;;  %s2819_s29 = smov (%p32_p5, %s2817_s29), 0 }
   0xf   : > { %2802 = sst [smem:[#allocation9_spill]] %s2819_s29  ;;  %p2445_p9 = por %p179_p6, %p178_p4 }
  0x10   : > { %p231_p10 = pnand %p1890_p7, %p230_p8  ;;  %s159_s7 = ssub.s32 %s2347_s24, %s2819_s29 }
  0x11   : > { %s162_s8 = sadd.s32 1, %s2331_s20  ;;  %p160_p11 = scmp.eq.s32.totalorder %s159_s7, 0 }
  0x12   : > { %234 = sbr.rel (%p231_p10) target bundleno = 2256 (0x8d0), region = 40  ;;  %s2795_s10 = sand.u32 (!%p231_p10), 1, %s2327_s19  }
  0x13   : > { %s2453_s9 = scalar_select %p160_p11, %s2331_s20, %s162_s8  }
  0x14   : > { %p271_p12 = scmp.lt.s32.totalorder (!%p231_p10), %s2339_s22, 1  ;;  %s1891_s11 = sshll.u32 (!%p231_p10), %s2795_s10, 3 }
  0x15   : > { %2804 = sst [smem:[#allocation10_spill]] %s2453_s9  ;;  %p275_p13 = scmp.lt.s32.totalorder (!%p231_p10), %s2335_s21, 1 }
  0x16   : > { %s2480_s15 = scalar_lea.vmem (!%p231_p10), [#allocation2], %s1891_s11  ;;  %p1897_p0 = scmp.ne.s32.totalorder (!%p231_p10), %s2335_s21, 0 }
  0x17   : > { %s272_s12 = scalar_select %p271_p12, %s2339_s22, 1 }
  0x18   : > { %s276_s13 = scalar_select %p275_p13, %s2335_s21, 1 }
  0x19   : > { %s1892_s14 = sshll.u32 %s272_s12, 3  ;;  %293 = sbr.rel (%p1897_p0) target bundleno = 35 (0x23), region = 44 }
  0x1a   : > { %s274_s17 = scalar_lea.vmem %s2786_s0, %s1892_s14  ;;  %s1934_s26 = sshll.u32 %s276_s13, 7 }
  0x1b   : > { %s2468_s8 = scalar_lea.vmem %s2788_s2, %s1934_s26  ;;  %s2155_s29 = smul.u32 48, %s276_s13 }
  0x1c   : > { %s1896_s28 = sshll.u32 %s276_s13, 3 }
  0x1d   : > { %s2473_s10 = scalar_lea.vmem %s2789_s3, %s2155_s29  ;;  %s2478_s12 = scalar_lea.vmem %s2790_s4, %s1896_s28 }
  0x1e   : > { %v294_v0 = vld [vmem:[%s274_s17] sm:$0xff]  ;;  %vm297_vm0 = vcmask 261120  }
  0x1f   : > { %v295_v1 = vld [vmem:[%s2787_s1] sm:$0xff] }
  0x20   : > { %v296_v2 = vadd.f32 %v295_v1, %v294_v0 }
  0x22   : > { %298 = vst.msk [vmem:[%s2480_s15] sm:$0xff] %vm297_vm0, %v296_v2 }
  0x23 PF: > { %vm341_vm1 = vcmask 261120   ;;  %v299_v10 = vld [vmem:[%s2468_s8] sm:$0xf]  ;;  %v301_v11 = vld [vmem:[%s2468_s8 + $0x8] sm:$0xf]  ;;  %v2353_v12 = vmov 0.0   ;;  %v356_v18 = vlaneseq }
  0x24   : > { %1991 = vmatprep.subr.bf16.mxu0 %v2353_v12  ;;  %1997 = vmatprep.subr.bf16.mxu1 %v2353_v12  ;;  %v431_v13 = vsel %vm341_vm1, %v299_v10, 0  ;;  %v474_v14 = vsel %vm341_vm1, %v301_v11, 0  ;;  %vm2354_vm2 = vmmov 0   ;;  %v2512_v21 = vld [vmem:[%s2478_s12] sm:$0xff]  ;;  %v303_v28 = vld [vmem:[%s2468_s8 + $0x10] sm:$0xf] }
  0x25   : > { %1992 = vmatpush3.bf16.xpose.msra.mxu0 %v431_v13  ;;  %1998 = vmatpush3.bf16.xpose.msra.mxu1 %v474_v14  ;;  %v2506_v19 = vshrl.u32 %v356_v18, 7  ;;  %v305_v29 = vld [vmem:[%s2468_s8 + $0x18] sm:$0xf]  ;;  %v517_v32 = vsel %vm341_vm1, %v303_v28, 0  ;;  %v307_v34 = vld [vmem:[%s2468_s8 + $0x20] sm:$0xf] }
  0x26   : > { %2003 = vmatprep.subr.bf16.mxu0 %v2353_v12  ;;  %2009 = vmatprep.subr.bf16.mxu1 %v2353_v12  ;;  %v560_v33 = vsel %vm341_vm1, %v305_v29, 0  ;;  %v309_v35 = vld [vmem:[%s2468_s8 + $0x28] sm:$0xf]  ;;  %v603_v36 = vsel %vm341_vm1, %v307_v34, 0  ;;  %v311_v38 = vld [vmem:[%s2468_s8 + $0x30] sm:$0xf] }
  0x27   : > { %1993 = vmatprep.mubr.msk.bf16.mxu0 %vm2354_vm2, %v2353_v12  ;;  %1999 = vmatprep.mubr.msk.bf16.mxu1 %vm2354_vm2, %v2353_v12  ;;  %v2509_v20 = vsub.s32 0, %v2506_v19  ;;  %v363_v22 = vsub.s32 1, %v2506_v19  ;;  %v646_v37 = vsel %vm341_vm1, %v309_v35, 0  ;;  %v313_v39 = vld [vmem:[%s2468_s8 + $0x38] sm:$0xf]  ;;  %v689_v40 = vsel %vm341_vm1, %v311_v38, 0 }
  0x28   : > { %v732_v41 = vsel %vm341_vm1, %v313_v39, 0  ;;  %v315_v42 = vld [vmem:[%s2468_s8 + $0x40] sm:$0xf]  ;;  %v317_v43 = vld [vmem:[%s2468_s8 + $0x48] sm:$0xf]  ;;  %vm962_vm3 = vcmask 64512  }
  0x29   : > { %v2488_v3 = vld [vmem:[%s2480_s15] sm:$0xff]  ;;  %v359_v23 = vrot.slane %v2512_v21, %v2509_v20  ;;  %v364_v26 = vrot.slane %v2512_v21, %v363_v22  ;;  %v775_v44 = vsel %vm341_vm1, %v315_v42, 0  ;;  %v818_v45 = vsel %vm341_vm1, %v317_v43, 0  ;;  %v319_v46 = vld [vmem:[%s2468_s8 + $0x50] sm:$0xf]  ;;  %s1931_s20 = sshll.u32 %s2339_s22, 7 }
  0x2a   : > { %v342_v4 = vsel %vm341_vm1, %v2488_v3, 0.0  ;;  %v321_v47 = vld [vmem:[%s2468_s8 + $0x58] sm:$0xf]  ;;  %v861_v48 = vsel %vm341_vm1, %v319_v46, 0  ;;  %v308_v58 = vld [vmem:[%s2468_s8 + $0x24] sm:$0x1]  ;;  %s2730_s28 = scalar_lea.hbm %s2791_s5, %s1931_s20 }
  0x2b   : > { %343 = vadd.xlane.f32.xlu0 %v342_v4  ;;  %v904_v49 = vsel %vm341_vm1, %v321_v47, 0  ;;  %v310_v59 = vld [vmem:[%s2468_s8 + $0x2c] sm:$0x1]  ;;  %v300_v60 = vld [vmem:[%s2468_s8 + $0x4] sm:$0x1]  ;;  %v371_v0 = vunpack.c.l.bf16 %v308_v58  ;;  %vm1198_vm4 = vcmask 1043456  }
  0x2c   : > { %v302_v61 = vld [vmem:[%s2468_s8 + $0xc] sm:$0x1]  ;;  %v372_v1 = vunpack.c.l.bf16 %v310_v59  ;;  %v367_v2 = vunpack.c.l.bf16 %v300_v60  ;;  %v304_v18 = vld [vmem:[%s2468_s8 + $0x14] sm:$0x1]  ;;  %v306_v22 = vld [vmem:[%s2468_s8 + $0x1c] sm:$0x1] }
  0x2d   : > { %v368_v4 = vunpack.c.l.bf16 %v302_v61  ;;  %v370_v34 = vunpack.c.l.bf16 %v306_v22  ;;  %v316_v43 = vld [vmem:[%s2468_s8 + $0x44] sm:$0x1]  ;;  %vm1720_vm6 = vcmask 523264   ;;  %s1780_s21 = sshll.u32 %s2480_s15, 4  ;;  %s2805_s22 = sand.u32 1, %s2327_s19   ;;  %s2732_s21 = int_to_ptr.vmem [resolvable:$true] %s1780_s21 }
  0x2e   : > { %v402_v10 = vrot.slane %v372_v1, %v2509_v20  ;;  %v382_v11 = vrot.slane %v367_v2, %v2509_v20  ;;  %s1767_s29 = scalar_lea.sflag [#allocation3], %s2805_s22  ;;  %s2259_s9 = scalar_lea.vmem %s2732_s21, 128 }
  0x2f   : > { %v386_v13 = vrot.slane %v368_v4, %v2509_v20  ;;  %p2260_p1 = scmp.ne.s32.totalorder %s2732_s21, %s2259_s9 }
  0x31   : > { %p2261_p2 = pnand %p2260_p1, %p2435_p3 }
  0x33   : > { %p2262_p4 = pneg %p2261_p2 }
  0xb4   : > { %v344_v5 = vpop.xlane.xlu0 %343 }
  0xb5   : > { %v346_v6 = vmul.f32 0.03125, %v344_v5 }
  0xb7   : > { %v347_v7 = vsub.f32 %v2488_v3, %v346_v6 }
  0xb9   : > { %v348_v8 = vmul.f32 %v347_v7, %v347_v7 }
  0xbb   : > { %v349_v9 = vsel %vm341_vm1, %v348_v8, 0.0 }
  0xbc   : > { %350 = vadd.xlane.f32.xlu0 %v349_v9  ;;  %v398_v9 = vrot.slane %v371_v0, %v2509_v20 }
 0x145   : > { %v351_v15 = vpop.xlane.xlu0 %350 }
 0x146   : > { %v352_v16 = vmul.f32 0.03125, %v351_v15 }
 0x148   : > { %v353_v17 = vadd.f32 1e-05, %v352_v16  ;;  %v312_v16 = vld [vmem:[%s2468_s8 + $0x34] sm:$0x1] }
 0x14a   : > { %2235 = vrsqrt.f32 %v353_v17  ;;  %v314_v17 = vld [vmem:[%s2468_s8 + $0x3c] sm:$0x1] }
 0x14b   : > { %v374_v28 = vunpack.c.l.bf16 %v314_v17 }
 0x14d   : > { %v410_v42 = vrot.slane %v374_v28, %v2509_v20 }
 0x157   : > { %v2236_v24 = vpop.eup %2235 }
 0x158   : > { %v355_v25 = vmul.f32 %v2236_v24, %v347_v7 }
 0x15a   : > { %v360_v27 = vmul.f32 %v359_v23, %v355_v25 }
 0x15c   : > { %v365_v30 = vadd.f32 %v364_v26, %v360_v27  ;;  %v373_v27 = vunpack.c.l.bf16 %v312_v16 }
 0x15e   : > { %v366_v31 = vpack.c.bf16 %v365_v30, %v365_v30 }
 0x160   : > { %1994 = vmatmul.mubr.msk.bf16.vlgmr.msra.gmra.mxu0 %vm341_vm1, %v366_v31  ;;  %2000 = vmatmul.mubr.msk.bf16.vlgmr.msra.gmra.mxu1 %vm341_vm1, %v366_v31 }
 0x161   : > { %2004 = vmatpush3.bf16.xpose.msra.mxu0 %v517_v32  ;;  %2010 = vmatpush3.bf16.xpose.msra.mxu1 %v560_v33  ;;  %v369_v33 = vunpack.c.l.bf16 %v304_v18 }
 0x162   : > { %2005 = vmatprep.mubr.msk.bf16.mxu0 %vm2354_vm2, %v2353_v12  ;;  %2011 = vmatprep.mubr.msk.bf16.mxu1 %vm2354_vm2, %v2353_v12 }
 0x163   : > { %2015 = vmatprep.subr.bf16.mxu0 %v2353_v12  ;;  %2021 = vmatprep.subr.bf16.mxu1 %v2353_v12 }
 0x168   : > { %2006 = vmatmul.mubr.msk.bf16.vlgmr.msra.gmra.mxu0 %vm341_vm1, %v366_v31  ;;  %2012 = vmatmul.mubr.msk.bf16.vlgmr.msra.gmra.mxu1 %vm341_vm1, %v366_v31 }
 0x169   : > { %2016 = vmatpush3.bf16.xpose.msra.mxu0 %v603_v36  ;;  %2022 = vmatpush3.bf16.xpose.msra.mxu1 %v646_v37 }
 0x16a   : > { %2017 = vmatprep.mubr.msk.bf16.mxu0 %vm2354_vm2, %v2353_v12  ;;  %2023 = vmatprep.mubr.msk.bf16.mxu1 %vm2354_vm2, %v2353_v12 }
 0x16b   : > { %2027 = vmatprep.subr.bf16.mxu0 %v2353_v12  ;;  %2033 = vmatprep.subr.bf16.mxu1 %v2353_v12 }
 0x170   : > { %2018 = vmatmul.mubr.msk.bf16.vlgmr.msra.gmra.mxu0 %vm341_vm1, %v366_v31  ;;  %2024 = vmatmul.mubr.msk.bf16.vlgmr.msra.gmra.mxu1 %vm341_vm1, %v366_v31 }
 0x171   : > { %2028 = vmatpush3.bf16.xpose.msra.mxu0 %v689_v40  ;;  %2034 = vmatpush3.bf16.xpose.msra.mxu1 %v732_v41  ;;  %v406_v41 = vrot.slane %v373_v27, %v2509_v20 }
 0x172   : > { %2029 = vmatprep.mubr.msk.bf16.mxu0 %vm2354_vm2, %v2353_v12  ;;  %2035 = vmatprep.mubr.msk.bf16.mxu1 %vm2354_vm2, %v2353_v12 }
 0x173   : > { %2039 = vmatprep.subr.bf16.mxu0 %v2353_v12  ;;  %2045 = vmatprep.subr.bf16.mxu1 %v2353_v12 }
 0x178   : > { %2030 = vmatmul.mubr.msk.bf16.vlgmr.msra.gmra.mxu0 %vm341_vm1, %v366_v31  ;;  %2036 = vmatmul.mubr.msk.bf16.vlgmr.msra.gmra.mxu1 %vm341_vm1, %v366_v31 }
 0x179   : > { %2040 = vmatpush3.bf16.xpose.msra.mxu0 %v775_v44  ;;  %2046 = vmatpush3.bf16.xpose.msra.mxu1 %v818_v45 }
 0x17a   : > { %2041 = vmatprep.mubr.msk.bf16.mxu0 %vm2354_vm2, %v2353_v12  ;;  %2047 = vmatprep.mubr.msk.bf16.mxu1 %vm2354_vm2, %v2353_v12 }
 0x17b   : > { %2051 = vmatprep.subr.bf16.mxu0 %v2353_v12  ;;  %2057 = vmatprep.subr.bf16.mxu1 %v2353_v12 }
 0x180   : > { %2042 = vmatmul.mubr.msk.bf16.vlgmr.msra.gmra.mxu0 %vm341_vm1, %v366_v31  ;;  %2048 = vmatmul.mubr.msk.bf16.vlgmr.msra.gmra.mxu1 %vm341_vm1, %v366_v31 }
 0x181   : > { %2052 = vmatpush3.bf16.xpose.msra.mxu0 %v861_v48  ;;  %2058 = vmatpush3.bf16.xpose.msra.mxu1 %v904_v49  ;;  %v318_v48 = vld [vmem:[%s2468_s8 + $0x4c] sm:$0x1]  ;;  %v390_v49 = vrot.slane %v369_v33, %v2509_v20 }
 0x182   : > { %2053 = vmatprep.mubr.msk.bf16.mxu0 %vm2354_vm2, %v2353_v12  ;;  %2059 = vmatprep.mubr.msk.bf16.mxu1 %vm2354_vm2, %v2353_v12 }
 0x183   : > { %2063 = vmatprep.subr.bf16.mxu0 %v2353_v12  ;;  %2069 = vmatprep.subr.bf16.mxu1 %v2353_v12 }
 0x188   : > { %2054 = vmatmul.mubr.msk.bf16.vlgmr.msra.gmra.mxu0 %vm341_vm1, %v366_v31  ;;  %2060 = vmatmul.mubr.msk.bf16.vlgmr.msra.gmra.mxu1 %vm341_vm1, %v366_v31 }
 0x189   : > { %2065 = vmatprep.mubr.msk.bf16.mxu0 %vm2354_vm2, %v2353_v12  ;;  %2071 = vmatprep.mubr.msk.bf16.mxu1 %vm2354_vm2, %v2353_v12 }
 0x220   : > { %v467_v50 = vpop.f32.mrf.mxu0  ;;  %v510_v51 = vpop.f32.mrf.mxu1 }
 0x221   : > { %v468_v29 = vadd.f32 %v467_v50, %v382_v11  ;;  %v511_v30 = vadd.f32 %v510_v51, %v386_v13  ;;  %v394_v50 = vrot.slane %v370_v34, %v2509_v20 }
 0x222   : > { %v1995_v52 = vpop.f32.mrf.mxu0  ;;  %v2001_v53 = vpop.f32.mrf.mxu1 }
 0x223   : > { %v946_v44 = vmul.f32 0.35355338, %v468_v29  ;;  %v947_v45 = vmul.f32 0.35355338, %v511_v30 }
 0x224   : > { %v470_v54 = vpop.f32.mrf.mxu0  ;;  %v513_v55 = vpop.f32.mrf.mxu1 }
 0x225   : > { %v375_v55 = vunpack.c.l.bf16 %v316_v43  ;;  %v951_v58 = vpack.c.bf16 %v947_v45, %v947_v45 }
 0x226   : > { %v1996_v56 = vpop.f32.mrf.mxu0  ;;  %v2002_v57 = vpop.f32.mrf.mxu1 }
 0x227   : > { %v376_v56 = vunpack.c.l.bf16 %v318_v48  ;;  %v950_v57 = vpack.c.bf16 %v946_v44, %v946_v44 }
 0x228   : > { %v2588_v62 = vpop.f32.mrf.mxu0  ;;  %v2590_v63 = vpop.f32.mrf.mxu1 }
 0x229   : > { %v554_v61 = vadd.f32 %v2588_v62, %v390_v49  ;;  %v597_v0 = vadd.f32 %v2590_v63, %v394_v50 }
 0x22a   : > { %v2007_v5 = vpop.f32.mrf.mxu0  ;;  %v2013_v6 = vpop.f32.mrf.mxu1 }
 0x22b   : > { %v948_v63 = vmul.f32 0.35355338, %v554_v61  ;;  %v949_v11 = vmul.f32 0.35355338, %v597_v0 }
 0x22c   : > { %v556_v7 = vpop.f32.mrf.mxu0  ;;  %v599_v8 = vpop.f32.mrf.mxu1 }
 0x22d   : > { %v414_v8 = vrot.slane %v375_v55, %v2509_v20  ;;  %v952_v22 = vpack.c.bf16 %v948_v63, %v948_v63 }
 0x22e   : > { %v2008_v14 = vpop.f32.mrf.mxu0  ;;  %v2014_v15 = vpop.f32.mrf.mxu1 }
 0x230   : > { %v639_v23 = vpop.f32.mrf.mxu0  ;;  %v682_v24 = vpop.f32.mrf.mxu1 }
 0x231   : > { %v640_v25 = vadd.f32 %v639_v23, %v398_v9  ;;  %v683_v26 = vadd.f32 %v682_v24, %v402_v10  ;;  %v418_v9 = vrot.slane %v376_v56, %v2509_v20  ;;  %v953_v23 = vpack.c.bf16 %v949_v11, %v949_v11 }
 0x232   : > { %v2019_v31 = vpop.f32.mrf.mxu0  ;;  %v2025_v32 = vpop.f32.mrf.mxu1 }
 0x233   : > { %v954_v35 = vpack.c.bf16 %v640_v25, %v640_v25  ;;  %v955_v36 = vpack.c.bf16 %v683_v26, %v683_v26 }
 0x234   : > { %v642_v37 = vpop.f32.mrf.mxu0  ;;  %v685_v38 = vpop.f32.mrf.mxu1 }
 0x235   : > { %v967_v39 = vsel %vm962_vm3, %v954_v35, 0  ;;  %v1013_v40 = vsel %vm962_vm3, %v955_v36, 0 }
 0x236   : > { %v2020_v46 = vpop.f32.mrf.mxu0  ;;  %v2026_v47 = vpop.f32.mrf.mxu1  ;;  %2064 = vmatpush3.bf16.xpose.msra.mxu0 %v967_v39  ;;  %2070 = vmatpush3.bf16.xpose.msra.mxu1 %v1013_v40 }
 0x237   : > { %2075 = vmatprep.subr.bf16.mxu0 %v2353_v12  ;;  %2081 = vmatprep.subr.bf16.mxu1 %v2353_v12 }
 0x238   : > { %v725_v51 = vpop.f32.mrf.mxu0  ;;  %v768_v52 = vpop.f32.mrf.mxu1 }
 0x239   : > { %v726_v53 = vadd.f32 %v725_v51, %v406_v41  ;;  %v769_v54 = vadd.f32 %v768_v52, %v410_v42 }
 0x23a   : > { %v2031_v59 = vpop.f32.mrf.mxu0  ;;  %v2037_v60 = vpop.f32.mrf.mxu1 }
 0x23b   : > { %v956_v1 = vpack.c.bf16 %v726_v53, %v726_v53  ;;  %v957_v2 = vpack.c.bf16 %v769_v54, %v769_v54 }
 0x23c   : > { %v728_v4 = vpop.f32.mrf.mxu0  ;;  %v771_v5 = vpop.f32.mrf.mxu1 }
 0x23d   : > { %v1059_v6 = vsel %vm962_vm3, %v956_v1, 0  ;;  %v1105_v7 = vsel %vm962_vm3, %v957_v2, 0  ;;  %2066 = vmatmul.mubr.msk.bf16.vlgmr.msra.gmra.mxu0 %vm962_vm3, %v950_v57  ;;  %2072 = vmatmul.mubr.msk.bf16.vlgmr.msra.gmra.mxu1 %vm962_vm3, %v951_v58 }
 0x23e   : > { %v2032_v10 = vpop.f32.mrf.mxu0  ;;  %v2038_v62 = vpop.f32.mrf.mxu1  ;;  %2076 = vmatpush3.bf16.xpose.msra.mxu0 %v1059_v6  ;;  %2082 = vmatpush3.bf16.xpose.msra.mxu1 %v1105_v7 }
 0x23f   : > { %2077 = vmatprep.mubr.msk.bf16.mxu0 %vm2354_vm2, %v2353_v12  ;;  %2083 = vmatprep.mubr.msk.bf16.mxu1 %vm2354_vm2, %v2353_v12 }
 0x240   : > { %v811_v13 = vpop.f32.mrf.mxu0  ;;  %v854_v14 = vpop.f32.mrf.mxu1  ;;  %2087 = vmatprep.subr.bf16.mxu0 %v2353_v12  ;;  %2093 = vmatprep.subr.bf16.mxu1 %v2353_v12 }
 0x241   : > { %v812_v15 = vadd.f32 %v811_v13, %v414_v8  ;;  %v855_v16 = vadd.f32 %v854_v14, %v418_v9 }
 0x242   : > { %v2043_v17 = vpop.f32.mrf.mxu0  ;;  %v2049_v18 = vpop.f32.mrf.mxu1 }
 0x243   : > { %v958_v24 = vpack.c.bf16 %v812_v15, %v812_v15  ;;  %v959_v25 = vpack.c.bf16 %v855_v16, %v855_v16  ;;  %v320_v18 = vld [vmem:[%s2468_s8 + $0x54] sm:$0x1] }
 0x244   : > { %v814_v26 = vpop.f32.mrf.mxu0  ;;  %v857_v27 = vpop.f32.mrf.mxu1 }
 0x245   : > { %v1200_v28 = vsel %vm1198_vm4, %v958_v24, 0  ;;  %v1246_v29 = vsel %vm1198_vm4, %v959_v25, 0  ;;  %2078 = vmatmul.mubr.msk.bf16.vlgmr.msra.gmra.mxu0 %vm962_vm3, %v952_v22  ;;  %2084 = vmatmul.mubr.msk.bf16.vlgmr.msra.gmra.mxu1 %vm962_vm3, %v953_v23  ;;  %v377_v23 = vunpack.c.l.bf16 %v320_v18  ;;  %v322_v24 = vld [vmem:[%s2468_s8 + $0x5c] sm:$0x1] }
 0x246   : > { %v2044_v30 = vpop.f32.mrf.mxu0  ;;  %v2050_v31 = vpop.f32.mrf.mxu1  ;;  %2088 = vmatpush3.bf16.msra.mxu0 %v1200_v28  ;;  %2094 = vmatpush3.bf16.msra.mxu1 %v1246_v29  ;;  %v378_v27 = vunpack.c.l.bf16 %v322_v24 }
 0x247   : > { %2089 = vmatprep.mubr.msk.bf16.mxu0 %vm2354_vm2, %v2353_v12  ;;  %2099 = vmatprep.subr.bf16.mxu0 %v2353_v12  ;;  %v422_v26 = vrot.slane %v377_v23, %v2509_v20 }
 0x248   : > { %v2631_v32 = vpop.f32.mrf.mxu0  ;;  %v2633_v33 = vpop.f32.mrf.mxu1  ;;  %2095 = vmatprep.mubr.msk.bf16.mxu1 %vm2354_vm2, %v2353_v12  ;;  %2105 = vmatprep.subr.bf16.mxu1 %v2353_v12  ;;  %v426_v31 = vrot.slane %v378_v27, %v2509_v20 }
 0x249   : > { %v898_v30 = vadd.f32 %v2631_v32, %v422_v26 }
 0x24a   : > { %v2055_v34 = vpop.f32.mrf.mxu0  ;;  %v2061_v35 = vpop.f32.mrf.mxu1 }
 0x24b   : > { %v960_v35 = vpack.c.bf16 %v898_v30, %v898_v30  ;;  %v1578_v30 = vsub.s32 4, %v2506_v19 }
 0x24c   : > { %v900_v36 = vpop.f32.mrf.mxu0  ;;  %v943_v37 = vpop.f32.mrf.mxu1 }
 0x24d   : > { %v941_v36 = vadd.f32 %v2633_v33, %v426_v31 }
 0x24e   : > { %v2056_v38 = vpop.f32.mrf.mxu0  ;;  %v2062_v39 = vpop.f32.mrf.mxu1 }
 0x2fd   : > { %v1003_v40 = vpop.f32.mrf.mxu0  ;;  %v1049_v41 = vpop.f32.mrf.mxu1 }
 0x2fe   : > { %v1147_v42 = vsel %vm962_vm3, %v1003_v40, -inf  ;;  %v1150_v47 = vsel %vm962_vm3, %v1049_v41, -inf }
 0x2ff   : > { %v2073_v43 = vpop.f32.mrf.mxu1  ;;  %1148 = vmax.xlane.f32.xlu1 %v1147_v42  ;;  %v2067_v44 = vpop.f32.mrf.mxu0 }
 0x300   : > { %v323_v44 = vld [vmem:[%s2468_s8 + $0x60] sm:$0xf] }
 0x301   : > { %v1006_v45 = vpop.f32.mrf.mxu0  ;;  %v1052_v46 = vpop.f32.mrf.mxu1 }
 0x303   : > { %v2074_v48 = vpop.f32.mrf.mxu1  ;;  %1151 = vmax.xlane.f32.xlu1 %v1150_v47  ;;  %v2068_v49 = vpop.f32.mrf.mxu0 }
 0x304   : > { %v1388_v48 = vsel %vm1198_vm4, %v323_v44, 0 }
 0x305   : > { %v1095_v50 = vpop.f32.mrf.mxu0  ;;  %v1141_v51 = vpop.f32.mrf.mxu1 }
 0x306   : > { %v1156_v52 = vsel %vm962_vm3, %v1141_v51, -inf  ;;  %v1153_v53 = vsel %vm962_vm3, %v1095_v50, -inf }
 0x307   : > { %v2085_v54 = vpop.f32.mrf.mxu1  ;;  %1157 = vmax.xlane.f32.xlu1 %v1156_v52  ;;  %1154 = vmax.xlane.f32.xlu0 %v1153_v53  ;;  %v2079_v55 = vpop.f32.mrf.mxu0  ;;  %v325_v52 = vld [vmem:[%s2468_s8 + $0x70] sm:$0xf] }
 0x308   : > { %v1480_v55 = vsel %vm1198_vm4, %v325_v52, 0 }
 0x309   : > { %v1098_v56 = vpop.f32.mrf.mxu0  ;;  %v1144_v57 = vpop.f32.mrf.mxu1 }
 0x30a   : > { %v326_v57 = vld [vmem:[%s2468_s8 + $0x78] sm:$0xf] }
 0x30b   : > { %v2080_v58 = vpop.f32.mrf.mxu0  ;;  %v2086_v59 = vpop.f32.mrf.mxu1 }
 0x388   : > { %v1149_v60 = vpop.xlane.xlu1 %1148 }
 0x389   : > { %v1159_v61 = vsub.f32 %v1003_v40, %v1149_v60  ;;  %v1292_v40 = vsel %vm1198_vm4, %v960_v35, 0 }
 0x38b   : > { %v1163_v0 = vmul.f32 1.442695, %v1159_v61  ;;  %v1526_v61 = vsel %vm1198_vm4, %v326_v57, 0 }
 0x38c   : > { %v1152_v1 = vpop.xlane.xlu1 %1151 }
 0x38d   : > { %2237 = vpow2.f32 %v1163_v0  ;;  %v1160_v2 = vsub.f32 %v1049_v41, %v1152_v1  ;;  %v961_v41 = vpack.c.bf16 %v941_v36, %v941_v36 }
 0x38f   : > { %v1165_v4 = vmul.f32 1.442695, %v1160_v2  ;;  %v1338_v33 = vsel %vm1198_vm4, %v961_v41, 0 }
 0x390   : > { %v1158_v5 = vpop.xlane.xlu1 %1157  ;;  %v1155_v6 = vpop.xlane.xlu0 %1154 }
 0x391   : > { %2239 = vpow2.f32 %v1165_v4  ;;  %v1162_v7 = vsub.f32 %v1141_v51, %v1158_v5  ;;  %v1161_v8 = vsub.f32 %v1095_v50, %v1155_v6  ;;  %v324_v50 = vld [vmem:[%s2468_s8 + $0x68] sm:$0xf] }
 0x392   : > { %v1434_v51 = vsel %vm1198_vm4, %v324_v50, 0  ;;  %v2230_v50 = vld [vmem:[%s2473_s10] sm:$0xff]  }
 0x393   : > { %v1169_v9 = vmul.f32 1.442695, %v1162_v7  ;;  %v1167_v10 = vmul.f32 1.442695, %v1161_v8 }
 0x395   : > { %2241 = vpow2.f32 %v1169_v9 }
 0x396   : > { %2243 = vpow2.f32 %v1167_v10 }
 0x39a   : > { %v2238_v62 = vpop.eup %2237 }
 0x39b   : > { %v1171_v63 = vsel %vm962_vm3, %v2238_v62, 0.0 }
 0x39c   : > { %1172 = vadd.xlane.f32.xlu0 %v1171_v63 }
 0x39e   : > { %v2240_v11 = vpop.eup %2239 }
 0x39f   : > { %v1174_v13 = vsel %vm962_vm3, %v2240_v11, 0.0 }
 0x3a0   : > { %1175 = vadd.xlane.f32.xlu1 %v1174_v13 }
 0x3a2   : > { %v2242_v14 = vpop.eup %2241 }
 0x3a3   : > { %v2244_v15 = vpop.eup %2243  ;;  %v1180_v16 = vsel %vm962_vm3, %v2242_v14, 0.0 }
 0x3a4   : > { %1181 = vadd.xlane.f32.xlu1 %v1180_v16  ;;  %v1177_v17 = vsel %vm962_vm3, %v2244_v15, 0.0 }
 0x3a5   : > { %1178 = vadd.xlane.f32.xlu0 %v1177_v17 }
 0x425   : > { %v1173_v22 = vpop.xlane.xlu0 %1172 }
 0x426   : > { %2245 = vrcp.f32 %v1173_v22 }
 0x429   : > { %v1176_v25 = vpop.xlane.xlu1 %1175 }
 0x42a   : > { %2247 = vrcp.f32 %v1176_v25 }
 0x42d   : > { %v1182_v28 = vpop.xlane.xlu1 %1181 }
 0x42e   : > { %2249 = vrcp.f32 %v1182_v28  ;;  %v1179_v29 = vpop.xlane.xlu0 %1178 }
 0x42f   : > { %2251 = vrcp.f32 %v1179_v29 }
 0x433   : > { %v2246_v34 = vpop.eup %2245 }
 0x434   : > { %v1184_v37 = vmul.f32 %v2246_v34, %v2238_v62 }
 0x436   : > { %v1191_v38 = vpack.c.bf16 %v1184_v37, %v1184_v37 }
 0x437   : > { %v2248_v39 = vpop.eup %2247 }
 0x438   : > { %2090 = vmatmul.mubr.msk.bf16.vlgmr.msra.gmra.mxu0 %vm962_vm3, %v1191_v38  ;;  %v1186_v42 = vmul.f32 %v2248_v39, %v2240_v11 }
 0x439   : > { %2100 = vmatpush3.bf16.msra.mxu0 %v1292_v40  ;;  %2101 = vmatprep.mubr.msk.bf16.mxu0 %vm2354_vm2, %v2353_v12  ;;  %v1579_v40 = vrot.slane %v2512_v21, %v1578_v30 }
 0x43a   : > { %v1192_v32 = vpack.c.bf16 %v1186_v42, %v1186_v42  ;;  %2111 = vmatprep.subr.bf16.mxu0 %v2353_v12 }
 0x43b   : > { %v2250_v20 = vpop.eup %2249 }
 0x43c   : > { %v2252_v43 = vpop.eup %2251  ;;  %2096 = vmatmul.mubr.msk.bf16.vlgmr.msra.gmra.mxu1 %vm962_vm3, %v1192_v32  ;;  %v1190_v46 = vmul.f32 %v2250_v20, %v2242_v14 }
 0x43d   : > { %2106 = vmatpush3.bf16.msra.mxu1 %v1338_v33  ;;  %v1188_v45 = vmul.f32 %v2252_v43, %v2244_v15  ;;  %2107 = vmatprep.mubr.msk.bf16.mxu1 %vm2354_vm2, %v2353_v12 }
 0x43e   : > { %2117 = vmatprep.subr.bf16.mxu1 %v2353_v12  ;;  %v1194_v49 = vpack.c.bf16 %v1190_v46, %v1190_v46 }
 0x43f   : > { %v1193_v47 = vpack.c.bf16 %v1188_v45, %v1188_v45 }
 0x441   : > { %2102 = vmatmul.mubr.msk.bf16.vlgmr.msra.gmra.mxu0 %vm962_vm3, %v1193_v47 }
 0x442   : > { %2112 = vmatpush3.bf16.msra.mxu0 %v1388_v48  ;;  %2113 = vmatprep.mubr.msk.bf16.mxu0 %vm2354_vm2, %v2353_v12 }
 0x443   : > { %2123 = vmatprep.subr.bf16.mxu0 %v2353_v12 }
 0x444   : > { %2108 = vmatmul.mubr.msk.bf16.vlgmr.msra.gmra.mxu1 %vm962_vm3, %v1194_v49  ;;  %v2229_v49 = vld [vmem:[%s2473_s10 + $0x8] sm:$0xff]  }
 0x445   : > { %2119 = vmatprep.mubr.msk.bf16.mxu1 %vm2354_vm2, %v2353_v12  ;;  %2118 = vmatpush3.bf16.msra.mxu1 %v1434_v51 }
 0x446   : > { %2129 = vmatprep.subr.bf16.mxu1 %v2353_v12 }
 0x4f8   : > { %v1236_v53 = vpop.f32.mrf.mxu0 }
 0x4f9   : > { %v1380_v54 = vpack.c.bf16 %v1236_v53, %v1236_v53  ;;  %v1596_v53 = vsub.s32 2, %v2506_v19 }
 0x4fa   : > { %v2091_v56 = vpop.f32.mrf.mxu0 }
 0x4fb   : > { %2114 = vmatmul.mubr.msk.bf16.vlgmr.msra.gmra.mxu0 %vm962_vm3, %v1380_v54  ;;  %v1601_v54 = vsub.s32 3, %v2506_v19 }
 0x4fc   : > { %v1239_v58 = vpop.f32.mrf.mxu0  ;;  %v1282_v59 = vpop.f32.mrf.mxu1  ;;  %2124 = vmatpush3.bf16.msra.mxu0 %v1480_v55  ;;  %2125 = vmatprep.mubr.msk.bf16.mxu0 %vm2354_vm2, %v2353_v12  ;;  %v1597_v55 = vrot.slane %v2512_v21, %v1596_v53 }
 0x4fd   : > { %v1381_v60 = vpack.c.bf16 %v1282_v59, %v1282_v59  ;;  %2135 = vmatprep.subr.bf16.mxu0 %v2353_v12  ;;  %v1602_v58 = vrot.slane %v2512_v21, %v1601_v54 }
 0x4fe   : > { %v2092_v0 = vpop.f32.mrf.mxu0  ;;  %v2097_v1 = vpop.f32.mrf.mxu1 }
 0x4ff   : > { %2120 = vmatmul.mubr.msk.bf16.vlgmr.msra.gmra.mxu1 %vm962_vm3, %v1381_v60  ;;  %v2231_v0 = vld [vmem:[%s2473_s10 + $0x28] sm:$0xff]   ;;  %v2232_v1 = vld [vmem:[%s2473_s10 + $0x20] sm:$0xff]  }
 0x500   : > { %v1285_v2 = vpop.f32.mrf.mxu1  ;;  %2130 = vmatpush3.bf16.msra.mxu1 %v1526_v61  ;;  %2131 = vmatprep.mubr.msk.bf16.mxu1 %vm2354_vm2, %v2353_v12 }
 0x501   : > { %v1328_v4 = vpop.f32.mrf.mxu0  ;;  %2143 = vmatprep.subr.bf16.mxu1 %v2353_v12  ;;  %v2233_v2 = vld [vmem:[%s2473_s10 + $0x18] sm:$0xff]  }
 0x502   : > { %v1382_v5 = vpack.c.bf16 %v1328_v4, %v1328_v4  ;;  %v2098_v6 = vpop.f32.mrf.mxu1  ;;  %v2234_v4 = vld [vmem:[%s2473_s10 + $0x10] sm:$0xff]   ;;  %s2355_s10 = smov [#allocation2]  }
 0x503   : > { %v2103_v7 = vpop.f32.mrf.mxu0  ;;  %s2263_s11 = sshll.u32 %s2355_s10, 4  ;;  %s2264_s11 = int_to_ptr.vmem [resolvable:$false] %s2263_s11 }
 0x504   : > { %2126 = vmatmul.mubr.msk.bf16.vlgmr.msra.gmra.mxu0 %vm962_vm3, %v1382_v5  ;;  %v1374_v8 = vpop.f32.mrf.mxu1  ;;  %v1607_v5 = vsub.s32 5, %v2506_v19  ;;  %s2265_s13 = scalar_lea.vmem %s2264_s11, 256  ;;  %p2266_p5 = scmp.lt.s32.totalorder %s2732_s21, %s2264_s11 }
 0x505   : > { %v1331_v9 = vpop.f32.mrf.mxu0  ;;  %v1383_v10 = vpack.c.bf16 %v1374_v8, %v1374_v8  ;;  %2139 = vmatprep.mubr.msk.bf16.mxu0 %vm2354_vm2, %v2353_v12  ;;  %2136 = vmatpush3.bf16.msra.mxu0 %v2229_v49  ;;  %p2267_p6 = scmp.lt.s32.totalorder %s2265_s13, %s2259_s9 }
 0x506   : > { %v2109_v62 = vpop.f32.mrf.mxu1  ;;  %2137 = vmatprep.subr.bf16.mxu0 %v2353_v12  ;;  %v1608_v6 = vrot.slane %v2512_v21, %v1607_v5 }
 0x507   : > { %v2104_v63 = vpop.f32.mrf.mxu0  ;;  %2132 = vmatmul.mubr.msk.bf16.vlgmr.msra.gmra.mxu1 %vm962_vm3, %v1383_v10  ;;  %p2268_p7 = por %p2267_p6, %p2266_p5 }
 0x508   : > { %v1377_v11 = vpop.f32.mrf.mxu1  ;;  %2151 = vmatprep.mubr.msk.bf16.mxu1 %vm2354_vm2, %v2353_v12  ;;  %2144 = vmatpush3.bf16.msra.mxu1 %v2231_v0 }
 0x509   : > { %2138 = vmatpush3.bf16.msra.mxu0 %v2230_v50  ;;  %2145 = vmatprep.subr.bf16.mxu1 %v2353_v12  ;;  %p2269_p8 = pnand %p2268_p7, %p2262_p4 }
 0x50a   : > { %v2110_v13 = vpop.f32.mrf.mxu1 }
 0x50c   : > { %2146 = vmatpush3.bf16.msra.mxu1 %v2232_v1 }
 0x50d   : > { %2147 = vmatprep.subr.bf16.mxu1 %v2353_v12 }
 0x510   : > { %2148 = vmatpush3.bf16.msra.mxu1 %v2233_v2 }
 0x511   : > { %2149 = vmatprep.subr.bf16.mxu1 %v2353_v12 }
 0x514   : > { %2150 = vmatpush3.bf16.msra.mxu1 %v2234_v4 }
 0x5bb   : > { %v1424_v14 = vpop.f32.mrf.mxu0 }
 0x5bc   : > { %v1568_v25 = vsel %vm341_vm1, %v1424_v14, 0.0 }
 0x5bd   : > { %v2115_v15 = vpop.f32.mrf.mxu0 }
 0x5bf   : > { %v1427_v16 = vpop.f32.mrf.mxu0  ;;  %v1470_v17 = vpop.f32.mrf.mxu1 }
 0x5c0   : > { %v1569_v23 = vsel %vm341_vm1, %v1470_v17, 0.0 }
 0x5c1   : > { %v2116_v18 = vpop.f32.mrf.mxu0  ;;  %v2121_v22 = vpop.f32.mrf.mxu1  ;;  %v1570_v27 = vadd.f32 %v1569_v23, %v1568_v25 }
 0x5c3   : > { %v1473_v24 = vpop.f32.mrf.mxu1 }
 0x5c4   : > { %v1516_v26 = vpop.f32.mrf.mxu0 }
 0x5c5   : > { %v1571_v28 = vsel %vm341_vm1, %v1516_v26, 0.0  ;;  %v2122_v29 = vpop.f32.mrf.mxu1 }
 0x5c6   : > { %v2127_v31 = vpop.f32.mrf.mxu0  ;;  %v1572_v34 = vadd.f32 %v1571_v28, %v1570_v27 }
 0x5c7   : > { %v1562_v35 = vpop.f32.mrf.mxu1 }
 0x5c8   : > { %v1519_v36 = vpop.f32.mrf.mxu0  ;;  %v1573_v37 = vsel %vm341_vm1, %v1562_v35, 0.0 }
 0x5c9   : > { %v1574_v38 = vadd.f32 %v1573_v37, %v1572_v34  ;;  %v2133_v39 = vpop.f32.mrf.mxu1 }
 0x5ca   : > { %v2128_v41 = vpop.f32.mrf.mxu0 }
 0x5cb   : > { %v1575_v42 = vadd.f32 %v1574_v38, %v2488_v3  ;;  %v1565_v32 = vpop.f32.mrf.mxu1  ;;  %v1694_v41 = vsub.s32 6, %v2506_v19 }
 0x5cd   : > { %v2134_v20 = vpop.f32.mrf.mxu1  ;;  %v2699_v43 = vadd.f32 %v1579_v40, %v1575_v42  ;;  %v1695_v42 = vrot.slane %v2512_v21, %v1694_v41 }
 0x5cf   : > { %v1581_v33 = vsel %vm341_vm1, %v2699_v43, 0.0 }
 0x5d0   : > { %1582 = vadd.xlane.f32.xlu0 %v1581_v33 }
 0x659   : > { %v1583_v44 = vpop.xlane.xlu0 %1582 }
 0x65a   : > { %v1584_v45 = vmul.f32 0.03125, %v1583_v44 }
 0x65c   : > { %v1585_v46 = vsub.f32 %v2699_v43, %v1584_v45 }
 0x65e   : > { %v1586_v47 = vmul.f32 %v1585_v46, %v1585_v46 }
 0x660   : > { %v1587_v48 = vsel %vm341_vm1, %v1586_v47, 0.0 }
 0x661   : > { %1588 = vadd.xlane.f32.xlu1 %v1587_v48 }
 0x6ea   : > { %v1589_v3 = vpop.xlane.xlu1 %1588 }
 0x6eb   : > { %v1590_v51 = vmul.f32 0.03125, %v1589_v3 }
 0x6ed   : > { %v1591_v52 = vadd.f32 1e-05, %v1590_v51 }
 0x6ef   : > { %2253 = vrsqrt.f32 %v1591_v52 }
 0x6fc   : > { %v2254_v56 = vpop.eup %2253 }
 0x6fd   : > { %v1593_v57 = vmul.f32 %v2254_v56, %v1585_v46 }
 0x6ff   : > { %v1598_v59 = vmul.f32 %v1597_v55, %v1593_v57 }
 0x701   : > { %v1603_v60 = vadd.f32 %v1602_v58, %v1598_v59 }
 0x703   : > { %v1604_v61 = vpack.c.bf16 %v1603_v60, %v1603_v60 }
 0x705   : > { %2140 = vmatmul.mubr.msk.bf16.vlgmr.msra.gmra.mxu0 %vm341_vm1, %v1604_v61 }
 0x7c5   : > { %v1658_v7 = vpop.f32.mrf.mxu0 }
 0x7c6   : > { %v1659_v8 = vadd.f32 %v1658_v7, %v1608_v6 }
 0x7c7   : > { %v2141_v9 = vpop.f32.mrf.mxu0 }
 0x7c8   : > { %v1665_v10 = vmul.f32 0.70710677, %v1659_v8  ;;  %v1664_v37 = vmul.f32 0.5, %v1659_v8 }
 0x7c9   : > { %v1661_v62 = vpop.f32.mrf.mxu0 }
 0x7ca   : > { %v1666_v63 = vand.u32 2147483647, %v1665_v10  ;;  %vm1686_vm5 = vcmp.ge.f32.partialorder %v1665_v10, 0.0 }
 0x7cb   : > { %v2142_v11 = vpop.f32.mrf.mxu0 }
 0x7cc   : > { %v1667_v13 = vmul.f32 0.3275911, %v1666_v63  ;;  %v1680_v15 = vsub.f32 0.0, %v1666_v63 }
 0x7ce   : > { %v1668_v14 = vadd.f32 1.0, %v1667_v13  ;;  %v1681_v16 = vmul.f32 %v1680_v15, %v1666_v63 }
 0x7d0   : > { %2255 = vrcp.f32 %v1668_v14  ;;  %v1682_v18 = vmul.f32 1.442695, %v1681_v16 }
 0x7d2   : > { %2257 = vpow2.f32 %v1682_v18 }
 0x7dd   : > { %v2256_v17 = vpop.eup %2255 }
 0x7de   : > { %v1671_v12 = vmul.f32 1.0614054, %v2256_v17 }
 0x7df   : > { %v2258_v30 = vpop.eup %2257 }
 0x7e0   : > { %v1672_v22 = vadd.f32 -1.4531521, %v1671_v12 }
 0x7e2   : > { %v1673_v23 = vmul.f32 %v2256_v17, %v1672_v22 }
 0x7e4   : > { %v1674_v24 = vadd.f32 1.4214138, %v1673_v23 }
 0x7e6   : > { %v1675_v25 = vmul.f32 %v2256_v17, %v1674_v24 }
 0x7e8   : > { %v1676_v26 = vadd.f32 -0.28449672, %v1675_v25 }
 0x7ea   : > { %v1677_v27 = vmul.f32 %v2256_v17, %v1676_v26 }
 0x7ec   : > { %v1678_v28 = vadd.f32 0.2548296, %v1677_v27 }
 0x7ee   : > { %v1679_v29 = vmul.f32 %v2256_v17, %v1678_v28 }
 0x7f0   : > { %v1684_v31 = vmul.f32 %v2258_v30, %v1679_v29 }
 0x7f2   : > { %v1685_v34 = vsub.f32 1.0, %v1684_v31 }
 0x7f4   : > { %v1687_v35 = vsub.f32 0.0, %v1685_v34 }
 0x7f6   : > { %v1688_v36 = vsel %vm1686_vm5, %v1685_v34, %v1687_v35 }
 0x7f7   : > { %v1689_v38 = vadd.f32 1.0, %v1688_v36 }
 0x7f9   : > { %v1690_v39 = vmul.f32 %v1689_v38, %v1664_v37 }
 0x7fb   : > { %v1691_v40 = vpack.c.bf16 %v1690_v39, %v1690_v39 }
 0x7fd   : > { %2152 = vmatmul.mubr.msk.bf16.vlgmr.msra.gmra.mxu1 %vm1720_vm6, %v1691_v40 }
 0x8bd   : > { %v1758_v32 = vpop.f32.mrf.mxu1 }
 0x8be   : > { %v1759_v20 = vadd.f32 %v1758_v32, %v1695_v42 }
 0x8bf   : > { %v2153_v33 = vpop.f32.mrf.mxu1 }
 0x8c0   : > { %v1764_v44 = vadd.f32 %v1759_v20, %v2699_v43 }
 0x8c1   : > { %v1761_v19 = vpop.f32.mrf.mxu1 }
 0x8c2   : > { %1765 = vst.msk [vmem:[%s2480_s15] sm:$0xff] %vm341_vm1, %v1764_v44 }
 0x8c3   : > { %v2154_v21 = vpop.f32.mrf.mxu1 }
 0x8c4   : > { %2272 = shalt.err (!%p2269_p8)
}
 0x8c5   : > { %s2273_s17 = scalar_lea.hbm %s2730_s28, 128  ;;  %s2277_s7 = scalar_lea.hbm %s2791_s5, 256 }
 0x8c6   : > { %p2274_p10 = scmp.ne.s32.totalorder %s2730_s28, %s2273_s17  ;;  %p2278_p13 = scmp.lt.s32.totalorder %s2730_s28, %s2791_s5 }
 0x8c7   : > { %p2279_p0 = scmp.lt.s32.totalorder %s2277_s7, %s2273_s17 }
 0x8c8   : > { %p2275_p11 = pnand %p2274_p10, %p2435_p3 }
 0x8c9   : > { %p2280_p1 = por %p2279_p0, %p2278_p13 }
 0x8ca   : > { %p2276_p12 = pneg %p2275_p11 }
 0x8cc   : > { %p2281_p2 = pnand %p2280_p1, %p2276_p12 }
 0x8ce   : > { %2284 = shalt.err (!%p2281_p2)
}
 0x8cf   : > { %2156 = dma.vmem_to_hbm [thread:$0]  (%p2435_p3), %s2732_s21, 128, %s2730_s28, %s1767_s29  }
 0x8d0 PF: > { %p2162_p4 = scmp.ge.s32.totalorder %s2351_s25, 2  ;;  %s1792_s15 = sand.u32 1, %s2323_s18  }
 0x8d1   : > { %s1793_s14 = scalar_lea.sflag [#allocation3], %s1792_s15 }
 0x8d2   : > { %p2159_p5 = pnand %p2162_p4, %p2445_p9 }
 0x8d4   : > { %p2160_p6 = pneg %p2159_p5 }
 0x8d6   : > { %2318 = dma.done.wait (%p2160_p6), %s1793_s14, 128  }
 0x8d7   : > { %2320 = vsyncadd (%p2160_p6), %s1793_s14, 4294967168  ;;  %s18_s25 = sadd.s32 1, %s2351_s25   ;;  %s2806_s30 = sld [smem:[#allocation5_spill]] }
 0x8d8   : > { %p15_p7 = scmp.ge.s32.totalorder %s18_s25, 6   ;;  %s2807_s20 = sld [smem:[#allocation10_spill]] }
 0x8d9   : > { %s2808_s21 = sld [smem:[#allocation6_spill]]  ;;  %s2812_s18 = smov %s2327_s19 }
 0x8da   : > { %s2809_s22 = sld [smem:[#allocation7_spill]]  ;;  %17 = sbr.rel (!%p15_p7) target bundleno = 5 (0x5), region = 88 }
 0x8db   : > { %s2810_s23 = sld [smem:[#allocation8_spill]] }
 0x8dc   : > { %s2811_s24 = sld [smem:[#allocation9_spill]] }
 0x8dd   : > { %s2813_s19 = smov %s2806_s30 }
 0x8df   :  { %1798 = vsyncpa [#allocation3], 1 }
 0x8e0   :  { %1800 = vsyncpa [#allocation3 + $0x1], 1 }

</bundles_post_ra>
